<compile_context>
chip_gen: v7x
topology: tpu7x:2x2x1
jax: 0.10.0
libtpu: 0.0.40
codegen_flags: <defaults>
</compile_context>

<pallas_src>
import math

import jax
import jax.numpy as jnp
from jax.experimental import pallas as pl
from jax.experimental.pallas import tpu as pltpu


def _actor_kernel(x_ref, w1_ref, b1_ref, w2_ref, b2_ref, w3_ref, b3_ref,
                  w4_ref, b4_ref, w5_ref, b5_ref, o_ref):
    # Feature extractor: Linear -> Tanh -> Linear -> Tanh  (bf16 MXU, f32 accumulate)
    x = x_ref[...].astype(jnp.bfloat16)
    h = jnp.tanh(
        jnp.dot(x, w1_ref[...], preferred_element_type=jnp.float32) + b1_ref[...])
    h = jnp.tanh(
        jnp.dot(h.astype(jnp.bfloat16), w2_ref[...],
                preferred_element_type=jnp.float32) + b2_ref[...])
    # Actor head: Linear -> Tanh -> Linear -> Tanh -> Linear -> Softmax
    h = jnp.tanh(
        jnp.dot(h.astype(jnp.bfloat16), w3_ref[...],
                preferred_element_type=jnp.float32) + b3_ref[...])
    h = jnp.tanh(
        jnp.dot(h.astype(jnp.bfloat16), w4_ref[...],
                preferred_element_type=jnp.float32) + b4_ref[...])
    logits = (jnp.dot(h.astype(jnp.bfloat16), w5_ref[...],
                      preferred_element_type=jnp.float32) + b5_ref[...])
    # Softmax over the (padded) action lanes; padded lanes carry a -1e30 bias so
    # exp(.) == 0 there and the real-action probabilities are unchanged.
    m = jnp.max(logits, axis=-1, keepdims=True)
    e = jnp.exp(logits - m)
    o_ref[...] = e / jnp.sum(e, axis=-1, keepdims=True)


def actor_forward(x, params, *, tb_max=512):
    """Runs the full actor MLP (+softmax) in one Pallas kernel. x: [B, state_size] f32."""
    (w1, b1), (w2, b2), (w3, b3), (w4, b4), (w5, b5) = params
    B, state_size = x.shape
    action_size = w5.shape[1]

    # Pad the action dim to a full 128-lane tile (lane-dense output stores).
    a_pad = ((action_size + 127) // 128) * 128
    if a_pad != action_size:
        w5p = jnp.zeros((w5.shape[0], a_pad), w5.dtype).at[:, :action_size].set(w5)
        b5p = jnp.full((1, a_pad), -1e30, jnp.float32).at[:, :action_size].set(b5)
    else:
        w5p, b5p = w5, b5

    # Batch tile: multiple of 8 (sublane granule), capped so resident bf16 weights
    # (~0.6 MB) plus double-buffered activation tiles stay far below v7x's 64 MiB VMEM.
    tb = min(tb_max, max(8, ((B + 7) // 8) * 8))
    b_pad = ((B + tb - 1) // tb) * tb
    if b_pad != B:
        x = jnp.zeros((b_pad, state_size), x.dtype).at[:B].set(x)

    grid = (b_pad // tb,)

    def const_spec(a):
        # Constant block index -> DMA'd once, stays VMEM-resident across grid steps.
        return pl.BlockSpec(a.shape, lambda i: (0,) * a.ndim)

    flops = 2 * b_pad * (state_size * w1.shape[1]
                         + w2.shape[0] * w2.shape[1]
                         + w3.shape[0] * w3.shape[1]
                         + w4.shape[0] * w4.shape[1]
                         + w5p.shape[0] * a_pad)
    transcendentals = b_pad * (w1.shape[1] + w2.shape[1] + w3.shape[1]
                               + w4.shape[1] + a_pad)
    bytes_accessed = (x.size * x.dtype.itemsize
                      + sum(int(a.size) * a.dtype.itemsize
                            for a in (w1, b1, w2, b2, w3, b3, w4, b4, w5p, b5p))
                      + b_pad * a_pad * 4)

    out = pl.pallas_call(
        _actor_kernel,
        out_shape=jax.ShapeDtypeStruct((b_pad, a_pad), jnp.float32),
        grid=grid,
        in_specs=[pl.BlockSpec((tb, state_size), lambda i: (i, 0)),
                  const_spec(w1), const_spec(b1),
                  const_spec(w2), const_spec(b2),
                  const_spec(w3), const_spec(b3),
                  const_spec(w4), const_spec(b4),
                  const_spec(w5p), const_spec(b5p)],
        out_specs=pl.BlockSpec((tb, a_pad), lambda i: (i, 0)),
        compiler_params=pltpu.CompilerParams(
            dimension_semantics=("parallel",)),
        cost_estimate=pl.CostEstimate(flops=flops,
                                      transcendentals=transcendentals,
                                      bytes_accessed=bytes_accessed),
    )(x, w1, b1, w2, b2, w3, b3, w4, b4, w5p, b5p)

    return out[:B, :action_size]  # [B, action_size] probabilities


def actor_reference(x, params):
    """Pure-JAX reference following the exact same dtype path as the kernel."""
    (w1, b1), (w2, b2), (w3, b3), (w4, b4), (w5, b5) = params
    h = jnp.tanh(jnp.dot(x.astype(jnp.bfloat16), w1,
                         preferred_element_type=jnp.float32) + b1)
    h = jnp.tanh(jnp.dot(h.astype(jnp.bfloat16), w2,
                         preferred_element_type=jnp.float32) + b2)
    h = jnp.tanh(jnp.dot(h.astype(jnp.bfloat16), w3,
                         preferred_element_type=jnp.float32) + b3)
    h = jnp.tanh(jnp.dot(h.astype(jnp.bfloat16), w4,
                         preferred_element_type=jnp.float32) + b4)
    logits = jnp.dot(h.astype(jnp.bfloat16), w5,
                     preferred_element_type=jnp.float32) + b5
    return jax.nn.softmax(logits, axis=-1)


def _torch_linear_init(key, fan_in, fan_out):
    """Mimics torch.nn.Linear default init U(-1/sqrt(fan_in), +1/sqrt(fan_in))."""
    bound = 1.0 / math.sqrt(fan_in)
    kw, kb = jax.random.split(key)
    # Stored as [in, out] (transposed vs PyTorch's [out, in]); weights bf16, bias f32.
    w = jax.random.uniform(kw, (fan_in, fan_out), jnp.float32, -bound, bound)
    b = jax.random.uniform(kb, (1, fan_out), jnp.float32, -bound, bound)
    return w.astype(jnp.bfloat16), b


def make_params(key, state_size, action_size, hidsize1=512, hidsize2=256, hidsize=256):
    k1, k2, k3, k4, k5 = jax.random.split(key, 5)
    p1 = _torch_linear_init(k1, state_size, hidsize1)   # feature extractor L1
    p2 = _torch_linear_init(k2, hidsize1, hidsize2)     # feature extractor L2
    p3 = _torch_linear_init(k3, hidsize2, hidsize)      # actor L1
    p4 = _torch_linear_init(k4, hidsize, hidsize)       # actor L2
    p5 = _torch_linear_init(k5, hidsize, action_size)   # actor L3 (logits)
    return (p1, p2, p3, p4, p5)


# TODO(synk): optimizer / save / load / Categorical log_prob+entropy (evaluate) are
# host-side training utilities, not part of the forward pass kernel.

if __name__ == "__main__":
    key = jax.random.PRNGKey(0)
    k_params, k_x = jax.random.split(key)

    batch = 8
    state_size = 32
    action_size = 5

    params = make_params(k_params, state_size, action_size)
    x = jax.random.normal(k_x, (batch, state_size), jnp.float32)

    probs = jax.block_until_ready(actor_forward(x, params))   # forward(): [B, A]
    ref = jax.block_until_ready(actor_reference(x, params))

    assert probs.shape == (batch, action_size)
    assert bool(jnp.all(jnp.isfinite(probs)))
    assert bool(jnp.all(jnp.abs(jnp.sum(probs, axis=-1) - 1.0) < 1e-3))
    assert bool(jnp.allclose(probs, ref, atol=2e-3, rtol=0))

    print("KERNEL_OK")
</pallas_src>

<mosaic_0001>
module attributes {stable_mosaic.version = 11 : i64} {
  func.func @_actor_kernel(%arg0: i32, %arg1: memref<8x32xf32, #tpu.memory_space<vmem>>, %arg2: memref<32x512xbf16, #tpu.memory_space<vmem>>, %arg3: memref<1x512xf32, #tpu.memory_space<vmem>>, %arg4: memref<512x256xbf16, #tpu.memory_space<vmem>>, %arg5: memref<1x256xf32, #tpu.memory_space<vmem>>, %arg6: memref<256x256xbf16, #tpu.memory_space<vmem>>, %arg7: memref<1x256xf32, #tpu.memory_space<vmem>>, %arg8: memref<256x256xbf16, #tpu.memory_space<vmem>>, %arg9: memref<1x256xf32, #tpu.memory_space<vmem>>, %arg10: memref<256x128xbf16, #tpu.memory_space<vmem>>, %arg11: memref<1x128xf32, #tpu.memory_space<vmem>>, %arg12: memref<8x128xf32, #tpu.memory_space<vmem>>) attributes {dimension_semantics = [#tpu.dimension_semantics<parallel>], iteration_bounds = array<i64: 1>, scalar_prefetch = 0 : i64, scratch_operands = 0 : i64, tpu.core_type = #tpu.core_type<tc>, window_params = [{transform_indices = @transform_0, window_bounds = array<i64: 8, 32>}, {pipeline_mode = #tpu.pipeline_mode<synchronous>, transform_indices = @transform_1, window_bounds = array<i64: 32, 512>}, {pipeline_mode = #tpu.pipeline_mode<synchronous>, transform_indices = @transform_2, window_bounds = array<i64: 1, 512>}, {pipeline_mode = #tpu.pipeline_mode<synchronous>, transform_indices = @transform_3, window_bounds = array<i64: 512, 256>}, {pipeline_mode = #tpu.pipeline_mode<synchronous>, transform_indices = @transform_4, window_bounds = array<i64: 1, 256>}, {pipeline_mode = #tpu.pipeline_mode<synchronous>, transform_indices = @transform_5, window_bounds = array<i64: 256, 256>}, {pipeline_mode = #tpu.pipeline_mode<synchronous>, transform_indices = @transform_6, window_bounds = array<i64: 1, 256>}, {pipeline_mode = #tpu.pipeline_mode<synchronous>, transform_indices = @transform_7, window_bounds = array<i64: 256, 256>}, {pipeline_mode = #tpu.pipeline_mode<synchronous>, transform_indices = @transform_8, window_bounds = array<i64: 1, 256>}, {pipeline_mode = #tpu.pipeline_mode<synchronous>, transform_indices = @transform_9, window_bounds = array<i64: 256, 128>}, {pipeline_mode = #tpu.pipeline_mode<synchronous>, transform_indices = @transform_10, window_bounds = array<i64: 1, 128>}, {transform_indices = @transform_11, window_bounds = array<i64: 8, 128>}]} {
    %c0 = arith.constant 0 : index
    %c0_0 = arith.constant 0 : index
    %0 = vector.load %arg1[%c0, %c0_0] : memref<8x32xf32, #tpu.memory_space<vmem>>, vector<8x32xf32>
    %1 = arith.truncf %0 : vector<8x32xf32> to vector<8x32xbf16>
    %c0_1 = arith.constant 0 : index
    %c0_2 = arith.constant 0 : index
    %2 = vector.load %arg2[%c0_1, %c0_2] : memref<32x512xbf16, #tpu.memory_space<vmem>>, vector<32x512xbf16>
    %cst = arith.constant dense<0.000000e+00> : vector<8x512xf32>
    %3 = tpu.matmul %1, %2, %cst {dimension_numbers = #tpu.dot_dimension_numbers<[1], [0], [0], [1], [0, 0, 1, 1], [], []>} : vector<8x32xbf16>, vector<32x512xbf16>, vector<8x512xf32> -> vector<8x512xf32>
    %c0_3 = arith.constant 0 : index
    %c0_4 = arith.constant 0 : index
    %4 = vector.load %arg3[%c0_3, %c0_4] : memref<1x512xf32, #tpu.memory_space<vmem>>, vector<1x512xf32>
    %5 = vector.broadcast %4 : vector<1x512xf32> to vector<8x512xf32>
    %6 = arith.addf %3, %5 : vector<8x512xf32>
    %7 = math.tanh %6 : vector<8x512xf32>
    %8 = arith.truncf %7 : vector<8x512xf32> to vector<8x512xbf16>
    %c0_5 = arith.constant 0 : index
    %c0_6 = arith.constant 0 : index
    %9 = vector.load %arg4[%c0_5, %c0_6] : memref<512x256xbf16, #tpu.memory_space<vmem>>, vector<512x256xbf16>
    %cst_7 = arith.constant dense<0.000000e+00> : vector<8x256xf32>
    %10 = tpu.matmul %8, %9, %cst_7 {dimension_numbers = #tpu.dot_dimension_numbers<[1], [0], [0], [1], [0, 0, 1, 1], [], []>} : vector<8x512xbf16>, vector<512x256xbf16>, vector<8x256xf32> -> vector<8x256xf32>
    %c0_8 = arith.constant 0 : index
    %c0_9 = arith.constant 0 : index
    %11 = vector.load %arg5[%c0_8, %c0_9] : memref<1x256xf32, #tpu.memory_space<vmem>>, vector<1x256xf32>
    %12 = vector.broadcast %11 : vector<1x256xf32> to vector<8x256xf32>
    %13 = arith.addf %10, %12 : vector<8x256xf32>
    %14 = math.tanh %13 : vector<8x256xf32>
    %15 = arith.truncf %14 : vector<8x256xf32> to vector<8x256xbf16>
    %c0_10 = arith.constant 0 : index
    %c0_11 = arith.constant 0 : index
    %16 = vector.load %arg6[%c0_10, %c0_11] : memref<256x256xbf16, #tpu.memory_space<vmem>>, vector<256x256xbf16>
    %cst_12 = arith.constant dense<0.000000e+00> : vector<8x256xf32>
    %17 = tpu.matmul %15, %16, %cst_12 {dimension_numbers = #tpu.dot_dimension_numbers<[1], [0], [0], [1], [0, 0, 1, 1], [], []>} : vector<8x256xbf16>, vector<256x256xbf16>, vector<8x256xf32> -> vector<8x256xf32>
    %c0_13 = arith.constant 0 : index
    %c0_14 = arith.constant 0 : index
    %18 = vector.load %arg7[%c0_13, %c0_14] : memref<1x256xf32, #tpu.memory_space<vmem>>, vector<1x256xf32>
    %19 = vector.broadcast %18 : vector<1x256xf32> to vector<8x256xf32>
    %20 = arith.addf %17, %19 : vector<8x256xf32>
    %21 = math.tanh %20 : vector<8x256xf32>
    %22 = arith.truncf %21 : vector<8x256xf32> to vector<8x256xbf16>
    %c0_15 = arith.constant 0 : index
    %c0_16 = arith.constant 0 : index
    %23 = vector.load %arg8[%c0_15, %c0_16] : memref<256x256xbf16, #tpu.memory_space<vmem>>, vector<256x256xbf16>
    %cst_17 = arith.constant dense<0.000000e+00> : vector<8x256xf32>
    %24 = tpu.matmul %22, %23, %cst_17 {dimension_numbers = #tpu.dot_dimension_numbers<[1], [0], [0], [1], [0, 0, 1, 1], [], []>} : vector<8x256xbf16>, vector<256x256xbf16>, vector<8x256xf32> -> vector<8x256xf32>
    %c0_18 = arith.constant 0 : index
    %c0_19 = arith.constant 0 : index
    %25 = vector.load %arg9[%c0_18, %c0_19] : memref<1x256xf32, #tpu.memory_space<vmem>>, vector<1x256xf32>
    %26 = vector.broadcast %25 : vector<1x256xf32> to vector<8x256xf32>
    %27 = arith.addf %24, %26 : vector<8x256xf32>
    %28 = math.tanh %27 : vector<8x256xf32>
    %29 = arith.truncf %28 : vector<8x256xf32> to vector<8x256xbf16>
    %c0_20 = arith.constant 0 : index
    %c0_21 = arith.constant 0 : index
    %30 = vector.load %arg10[%c0_20, %c0_21] : memref<256x128xbf16, #tpu.memory_space<vmem>>, vector<256x128xbf16>
    %cst_22 = arith.constant dense<0.000000e+00> : vector<8x128xf32>
    %31 = tpu.matmul %29, %30, %cst_22 {dimension_numbers = #tpu.dot_dimension_numbers<[1], [0], [0], [1], [0, 0, 1, 1], [], []>} : vector<8x256xbf16>, vector<256x128xbf16>, vector<8x128xf32> -> vector<8x128xf32>
    %c0_23 = arith.constant 0 : index
    %c0_24 = arith.constant 0 : index
    %32 = vector.load %arg11[%c0_23, %c0_24] : memref<1x128xf32, #tpu.memory_space<vmem>>, vector<1x128xf32>
    %33 = vector.broadcast %32 : vector<1x128xf32> to vector<8x128xf32>
    %34 = arith.addf %31, %33 : vector<8x128xf32>
    %cst_25 = arith.constant dense<0xFF800000> : vector<8xf32>
    %35 = vector.multi_reduction <maximumf>, %34, %cst_25 [1] : vector<8x128xf32> to vector<8xf32>
    %36 = vector.shape_cast %35 : vector<8xf32> to vector<8x1xf32>
    %37 = vector.broadcast %36 : vector<8x1xf32> to vector<8x128xf32>
    %38 = arith.subf %34, %37 : vector<8x128xf32>
    %39 = math.exp %38 : vector<8x128xf32>
    %cst_26 = arith.constant dense<0.000000e+00> : vector<8xf32>
    %40 = vector.multi_reduction <add>, %39, %cst_26 [1] : vector<8x128xf32> to vector<8xf32>
    %41 = vector.shape_cast %40 : vector<8xf32> to vector<8x1xf32>
    %42 = vector.broadcast %41 : vector<8x1xf32> to vector<8x128xf32>
    %43 = arith.divf %39, %42 : vector<8x128xf32>
    %c0_27 = arith.constant 0 : index
    %c0_28 = arith.constant 0 : index
    %44 = vector.load %arg12[%c0_27, %c0_28] : memref<8x128xf32, #tpu.memory_space<vmem>>, vector<8x128xf32>
    tpu.vector_store %arg12[%c0_27, %c0_28], %43 {strides = array<i32>} : memref<8x128xf32, #tpu.memory_space<vmem>>, vector<8x128xf32>,
    return
  }
  func.func @transform_0(%arg0: i32) -> (i32, i32) {
    %c0_i32 = arith.constant 0 : i32
    %c0_i32_0 = arith.constant 0 : i32
    return %arg0, %c0_i32 : i32, i32
  }
  func.func @transform_1(%arg0: i32) -> (i32, i32) {
    %c0_i32 = arith.constant 0 : i32
    %c0_i32_0 = arith.constant 0 : i32
    %c0_i32_1 = arith.constant 0 : i32
    return %c0_i32, %c0_i32_0 : i32, i32
  }
  func.func @transform_2(%arg0: i32) -> (i32, i32) {
    %c0_i32 = arith.constant 0 : i32
    %c0_i32_0 = arith.constant 0 : i32
    %c0_i32_1 = arith.constant 0 : i32
    return %c0_i32, %c0_i32_0 : i32, i32
  }
  func.func @transform_3(%arg0: i32) -> (i32, i32) {
    %c0_i32 = arith.constant 0 : i32
    %c0_i32_0 = arith.constant 0 : i32
    %c0_i32_1 = arith.constant 0 : i32
    return %c0_i32, %c0_i32_0 : i32, i32
  }
  func.func @transform_4(%arg0: i32) -> (i32, i32) {
    %c0_i32 = arith.constant 0 : i32
    %c0_i32_0 = arith.constant 0 : i32
    %c0_i32_1 = arith.constant 0 : i32
    return %c0_i32, %c0_i32_0 : i32, i32
  }
  func.func @transform_5(%arg0: i32) -> (i32, i32) {
    %c0_i32 = arith.constant 0 : i32
    %c0_i32_0 = arith.constant 0 : i32
    %c0_i32_1 = arith.constant 0 : i32
    return %c0_i32, %c0_i32_0 : i32, i32
  }
  func.func @transform_6(%arg0: i32) -> (i32, i32) {
    %c0_i32 = arith.constant 0 : i32
    %c0_i32_0 = arith.constant 0 : i32
    %c0_i32_1 = arith.constant 0 : i32
    return %c0_i32, %c0_i32_0 : i32, i32
  }
  func.func @transform_7(%arg0: i32) -> (i32, i32) {
    %c0_i32 = arith.constant 0 : i32
    %c0_i32_0 = arith.constant 0 : i32
    %c0_i32_1 = arith.constant 0 : i32
    return %c0_i32, %c0_i32_0 : i32, i32
  }
  func.func @transform_8(%arg0: i32) -> (i32, i32) {
    %c0_i32 = arith.constant 0 : i32
    %c0_i32_0 = arith.constant 0 : i32
    %c0_i32_1 = arith.constant 0 : i32
    return %c0_i32, %c0_i32_0 : i32, i32
  }
  func.func @transform_9(%arg0: i32) -> (i32, i32) {
    %c0_i32 = arith.constant 0 : i32
    %c0_i32_0 = arith.constant 0 : i32
    %c0_i32_1 = arith.constant 0 : i32
    return %c0_i32, %c0_i32_0 : i32, i32
  }
  func.func @transform_10(%arg0: i32) -> (i32, i32) {
    %c0_i32 = arith.constant 0 : i32
    %c0_i32_0 = arith.constant 0 : i32
    %c0_i32_1 = arith.constant 0 : i32
    return %c0_i32, %c0_i32_0 : i32, i32
  }
  func.func @transform_11(%arg0: i32) -> (i32, i32) {
    %c0_i32 = arith.constant 0 : i32
    %c0_i32_0 = arith.constant 0 : i32
    return %arg0, %c0_i32 : i32, i32
  }
}

</mosaic_0001>

<bundles_post_ra>
// kernel: tpu_custom_call.1
= control target key start
LH: loop header
LB: loop body
LE: loop exit
PB: predicated region body
PF: predicated region fallthrough
CT: control target
= control target key end

     0   :  { %16 = vsyncpa [#allocation3], 0  ;;  %s2285_s0 = inlined_call_operand.hbm [shape: f32[8,32], index: 0, kind: input, shape index: {}]   ;;  %s2286_s1 = inlined_call_operand.hbm [shape: bf16[32,512], index: 1, kind: input, shape index: {}]   ;;  %s2287_s2 = inlined_call_operand.vmem [shape: f32[1,512], index: 2, kind: input, shape index: {}]   ;;  %s2288_s3 = inlined_call_operand.hbm [shape: bf16[512,256], index: 3, kind: input, shape index: {}]   ;;  %s2289_s4 = inlined_call_operand.vmem [shape: f32[1,256], index: 4, kind: input, shape index: {}]   ;;  %s2290_s5 = inlined_call_operand.hbm [shape: bf16[256,256], index: 5, kind: input, shape index: {}]   ;;  %s2291_s6 = inlined_call_operand.vmem [shape: f32[1,256], index: 6, kind: input, shape index: {}]   ;;  %s2292_s7 = inlined_call_operand.hbm [shape: bf16[256,256], index: 7, kind: input, shape index: {}]   ;;  %s2293_s8 = inlined_call_operand.vmem [shape: f32[1,256], index: 8, kind: input, shape index: {}]   ;;  %s2294_s9 = inlined_call_operand.hbm [shape: bf16[256,128], index: 9, kind: input, shape index: {}]   ;;  %s2295_s10 = inlined_call_operand.vmem [shape: f32[1,128], index: 10, kind: input, shape index: {}]   ;;  %s2296_s11 = inlined_call_operand.hbm [shape: f32[8,128], index: 11, kind: output, shape index: {}]  }
   0x1   :  { %17 = vsyncpa [#allocation6], 0 }
   0x2   :  { %18 = vsyncpa [#allocation9], 0 }
   0x3   :  { %19 = vsyncpa [#allocation12], 0 }
   0x4   :  { %20 = vsyncpa [#allocation4], 0  ;;  %s2074_s17 = smov [#allocation5]   ;;  %s1910_s21 = scalar_lea.hbm %s2286_s1, 1024 }
   0x5   :  { %s36_s18 = sshll.u32 %s2074_s17, 4  ;;  %p1911_p0 = scmp.ne.s32.totalorder %s2286_s1, %s1910_s21  ;;  %s37_s18 = int_to_ptr.vmem [resolvable:$true] %s36_s18 }
   0x6   :  { %p1914_p1 = scmp.lt.u32.totalorder %s1910_s21, %s2286_s1 }
   0x8   :  { %p1916_p2 = pnand %p1914_p1, %p1911_p0 }
   0xa   :  { %1919 = shalt.err (!%p1916_p2)
}
   0xb   :  { %s1920_s26 = scalar_lea.vmem %s37_s18, 1024  ;;  %p1925_p4 = scmp.lt.s32.totalorder %s37_s18, %s37_s18 }
   0xc   :  { %p1921_p3 = scmp.ne.s32.totalorder %s37_s18, %s1920_s26  ;;  %p1926_p5 = scmp.lt.s32.totalorder %s1920_s26, %s1920_s26 }
   0xe   :  { %p1927_p6 = por %p1926_p5, %p1925_p4 }
  0x10   :  { %p1928_p7 = pnand %p1927_p6, %p1921_p3 }
  0x12   :  { %1931 = shalt.err (!%p1928_p7)
}
  0x13   :  { %s2075_s27 = smov 256   ;;  %s2076_s28 = smov 16  }
  0x14   :  { %42 = dma.hbm_to_vmem [thread:$0]  %s2286_s1, 1024, %s37_s18, [#allocation6], %s2075_s27, %s2075_s27, %s2076_s28  }
  0x15   :  { %s2077_s12 = smov [#allocation8]   ;;  %s2078_s14 = smov [#allocation2]  }
  0x16   :  { %s64_s13 = sshll.u32 %s2077_s12, 4  ;;  %s27_s15 = sshll.u32 %s2078_s14, 4  ;;  %s65_s13 = int_to_ptr.vmem [resolvable:$true] %s64_s13  ;;  %s28_s15 = int_to_ptr.vmem [resolvable:$true] %s27_s15 }
  0x17   :  { %s1932_s19 = scalar_lea.hbm %s2290_s5, 4096 }
  0x18   :  { %p1933_p8 = scmp.ne.s32.totalorder %s2290_s5, %s1932_s19  ;;  %p1936_p9 = scmp.lt.u32.totalorder %s1932_s19, %s2290_s5 }
  0x1a   :  { %p1938_p10 = pnand %p1936_p9, %p1933_p8 }
  0x1c   :  { %1941 = shalt.err (!%p1938_p10)
}
  0x1d   :  { %s1942_s1 = scalar_lea.vmem %s65_s13, 4096  ;;  %p1947_p12 = scmp.lt.s32.totalorder %s65_s13, %s65_s13 }
  0x1e   :  { %p1943_p11 = scmp.ne.s32.totalorder %s65_s13, %s1942_s1  ;;  %p1948_p13 = scmp.lt.s32.totalorder %s1942_s1, %s1942_s1 }
  0x20   :  { %p1949_p0 = por %p1948_p13, %p1947_p12 }
  0x22   :  { %p1950_p1 = pnand %p1949_p0, %p1943_p11 }
  0x24   :  { %1953 = shalt.err (!%p1950_p1)
}
  0x25   :  { %s2079_s18 = smov 128   ;;  %s2080_s24 = smov 8  }
  0x26   :  { %70 = dma.hbm_to_vmem [thread:$0]  %s2290_s5, 4096, %s65_s13, [#allocation9], %s2079_s18, %s2079_s18, %s2080_s24  }
  0x27   :  { %s1954_s29 = scalar_lea.hbm %s2285_s0, 128 }
  0x28   :  { %p1955_p2 = scmp.ne.s32.totalorder %s2285_s0, %s1954_s29  ;;  %p1958_p3 = scmp.lt.u32.totalorder %s1954_s29, %s2285_s0 }
  0x2a   :  { %p1960_p4 = pnand %p1958_p3, %p1955_p2 }
  0x2c   :  { %1963 = shalt.err (!%p1960_p4)
}
  0x2d   :  { %s1964_s17 = scalar_lea.vmem %s28_s15, 128  ;;  %p1969_p6 = scmp.lt.s32.totalorder %s28_s15, %s28_s15 }
  0x2e   :  { %p1965_p5 = scmp.ne.s32.totalorder %s28_s15, %s1964_s17  ;;  %p1970_p7 = scmp.lt.s32.totalorder %s1964_s17, %s1964_s17 }
  0x30   :  { %p1971_p8 = por %p1970_p7, %p1969_p6 }
  0x32   :  { %p1972_p9 = pnand %p1971_p8, %p1965_p5 }
  0x34   :  { %1975 = shalt.err (!%p1972_p9)
}
  0x35   :  { %30 = dma.hbm_to_vmem [thread:$0]  %s2285_s0, 128, %s28_s15, [#allocation3]  }
  0x36   :  { %s2081_s19 = smov [#allocation7]   ;;  %s2082_s21 = smov [#allocation10]  }
  0x37   :  { %s50_s20 = sshll.u32 %s2081_s19, 4  ;;  %s78_s22 = sshll.u32 %s2082_s21, 4  ;;  %s51_s20 = int_to_ptr.vmem [resolvable:$true] %s50_s20  ;;  %s79_s22 = int_to_ptr.vmem [resolvable:$true] %s78_s22 }
  0x38   :  { %s1976_s25 = scalar_lea.hbm %s2288_s3, 8192 }
  0x39   :  { %p1977_p10 = scmp.ne.s32.totalorder %s2288_s3, %s1976_s25  ;;  %p1980_p11 = scmp.lt.u32.totalorder %s1976_s25, %s2288_s3 }
  0x3b   :  { %p1982_p12 = pnand %p1980_p11, %p1977_p10 }
  0x3d   :  { %1985 = shalt.err (!%p1982_p12)
}
  0x3e   :  { %s1986_s0 = scalar_lea.vmem %s51_s20, 8192  ;;  %p1991_p0 = scmp.lt.s32.totalorder %s51_s20, %s51_s20 }
  0x3f   :  { %p1987_p13 = scmp.ne.s32.totalorder %s51_s20, %s1986_s0  ;;  %p1992_p1 = scmp.lt.s32.totalorder %s1986_s0, %s1986_s0 }
  0x41   :  { %p1993_p2 = por %p1992_p1, %p1991_p0 }
  0x43   :  { %p1994_p3 = pnand %p1993_p2, %p1987_p13 }
  0x45   :  { %1997 = shalt.err (!%p1994_p3)
}
  0x46   :  { %56 = dma.hbm_to_vmem [thread:$0]  %s2288_s3, 8192, %s51_s20, [#allocation6], %s2079_s18, %s2079_s18, %s2080_s24  }
  0x47   :  { %s1998_s16 = scalar_lea.hbm %s2292_s7, 4096 }
  0x48   :  { %p1999_p4 = scmp.ne.s32.totalorder %s2292_s7, %s1998_s16  ;;  %p2002_p5 = scmp.lt.u32.totalorder %s1998_s16, %s2292_s7 }
  0x4a   :  { %p2004_p6 = pnand %p2002_p5, %p1999_p4 }
  0x4c   :  { %2007 = shalt.err (!%p2004_p6)
}
  0x4d   :  { %s2008_s21 = scalar_lea.vmem %s79_s22, 4096  ;;  %p2013_p8 = scmp.lt.s32.totalorder %s79_s22, %s79_s22 }
  0x4e   :  { %p2009_p7 = scmp.ne.s32.totalorder %s79_s22, %s2008_s21  ;;  %p2014_p9 = scmp.lt.s32.totalorder %s2008_s21, %s2008_s21 }
  0x50   :  { %p2015_p10 = por %p2014_p9, %p2013_p8 }
  0x52   :  { %p2016_p11 = pnand %p2015_p10, %p2009_p7 }
  0x54   :  { %2019 = shalt.err (!%p2016_p11)
}
  0x55   :  { %84 = dma.hbm_to_vmem [thread:$0]  %s2292_s7, 4096, %s79_s22, [#allocation9], %s2079_s18, %s2079_s18, %s2080_s24  }
  0x56   :  { %s2083_s23 = smov [#allocation11]   ;;  %s2020_s27 = scalar_lea.hbm %s2294_s9, 2048 }
  0x57   :  { %s92_s1 = sshll.u32 %s2083_s23, 4  ;;  %p2021_p12 = scmp.ne.s32.totalorder %s2294_s9, %s2020_s27  ;;  %s93_s1 = int_to_ptr.vmem [resolvable:$true] %s92_s1 }
  0x58   :  { %p2024_p13 = scmp.lt.u32.totalorder %s2020_s27, %s2294_s9 }
  0x5a   :  { %p2026_p0 = pnand %p2024_p13, %p2021_p12 }
  0x5c   :  { %2029 = shalt.err (!%p2026_p0)
}
  0x5d   :  { %s2030_s30 = scalar_lea.vmem %s93_s1, 2048  ;;  %p2035_p2 = scmp.lt.s32.totalorder %s93_s1, %s93_s1 }
  0x5e   :  { %p2031_p1 = scmp.ne.s32.totalorder %s93_s1, %s2030_s30  ;;  %p2036_p3 = scmp.lt.s32.totalorder %s2030_s30, %s2030_s30 }
  0x60   :  { %p2037_p4 = por %p2036_p3, %p2035_p2 }
  0x62   :  { %p2038_p5 = pnand %p2037_p4, %p2031_p1 }
  0x64   :  { %2041 = shalt.err (!%p2038_p5)
}
  0x65   :  { %s2084_s7 = smov 64   ;;  %s2085_s18 = smov 4  }
  0x66   :  { %98 = dma.hbm_to_vmem [thread:$0]  %s2294_s9, 2048, %s93_s1, [#allocation12], %s2084_s7, %s2084_s7, %s2085_s18  }
  0x67   :  { %2064 = dma.done.wait [#allocation3], 128  }
  0x68   :  { %2065 = vsyncadd [#allocation3], 4294967168 }
  0x69   :  { %2066 = dma.done.wait [#allocation6], 9216  }
  0x6a   :  { %2067 = vsyncadd [#allocation6], 4294958080 }
  0x6b   :  { %2068 = dma.done.wait [#allocation9], 8192  }
  0x6c   :  { %2069 = vsyncadd [#allocation9], 4294959104 }
  0x6d   :  { %2070 = dma.done.wait [#allocation12], 2048  }
  0x6e   :  { %2071 = vsyncadd [#allocation12], 4294965248  ;;  %v2086_v0 = vmov 0   ;;  %v1666_v1 = vld [vmem:[#allocation5 + $0x4] ss:$16 sps:$4 sm:$0xff]   ;;  %v120_v5 = vld [vmem:[#allocation2] sm:$0xff]  ;;  %v132_v61 = vlaneseq }
  0x6f   :  { %228 = vmatprep.mubr.bf16.mxu1 %v2086_v0  ;;  %v1668_v2 = vld [vmem:[#allocation5] ss:$16 sps:$4 sm:$0xff]   ;;  %196 = vmatprep.subr.bf16.mxu1 %v1666_v1  ;;  %v1669_v3 = vld [vmem:[#allocation5 + $0x24] ss:$16 sps:$4 sm:$0xff]   ;;  %v1674_v6 = vld [vmem:[#allocation5 + $0xc] ss:$16 sps:$4 sm:$0xff]   ;;  %v121_v8 = vpack.c.bf16 %v120_v5, %v120_v5 }
  0x70   :  { %v1671_v4 = vld [vmem:[#allocation5 + $0x20] ss:$16 sps:$4 sm:$0xff]   ;;  %197 = vmatpush1.bf16.msra.mxu1 %v1668_v2  ;;  %v1672_v7 = vld [vmem:[#allocation5 + $0x8] ss:$16 sps:$4 sm:$0xff]   ;;  %v1678_v9 = vld [vmem:[#allocation7 + $0x4] ss:$8 sps:$4 sm:$0xff]  }
  0x71   :  { %198 = vmatprep.subr.bf16.mxu1 %v1669_v3  ;;  %v1680_v10 = vld [vmem:[#allocation7] ss:$8 sps:$4 sm:$0xff]   ;;  %vm192_vm0 = vcmask 261120   ;;  %v1681_v11 = vld [vmem:[#allocation7 + $0x14] ss:$8 sps:$4 sm:$0xff]   ;;  %682 = vmatprep.subr.bf16.mxu0 %v1678_v9  ;;  %s2087_s13 = smov [#allocation13]  }
  0x72   :  { %v1677_v12 = vld [vmem:[#allocation5 + $0x2c] ss:$16 sps:$4 sm:$0xff]   ;;  %683 = vmatpush1.bf16.msra.mxu0 %v1680_v10  ;;  %v1683_v13 = vld [vmem:[#allocation7 + $0x10] ss:$8 sps:$4 sm:$0xff]   ;;  %v1686_v16 = vld [vmem:[#allocation7 + $0x20] ss:$8 sps:$4 sm:$0xff]  }
  0x73   :  { %684 = vmatprep.subr.bf16.mxu0 %v1681_v11  ;;  %v1684_v14 = vld [vmem:[#allocation7 + $0x24] ss:$8 sps:$4 sm:$0xff]   ;;  %v1675_v15 = vld [vmem:[#allocation5 + $0x28] ss:$16 sps:$4 sm:$0xff]   ;;  %v1687_v17 = vld [vmem:[#allocation7 + $0x34] ss:$8 sps:$4 sm:$0xff]  }
  0x74   :  { %199 = vmatpush1.bf16.msra.mxu1 %v1671_v4  ;;  %v1689_v18 = vld [vmem:[#allocation7 + $0x30] ss:$8 sps:$4 sm:$0xff]   ;;  %v1690_v19 = vld [vmem:[#allocation7 + $0x44] ss:$8 sps:$4 sm:$0xff]   ;;  %v1692_v20 = vld [vmem:[#allocation7 + $0x40] ss:$8 sps:$4 sm:$0xff]  }
  0x75   :  { %237 = vmatprep.subr.bf16.mxu1 %v1674_v6  ;;  %v1693_v21 = vld [vmem:[#allocation7 + $0x54] ss:$8 sps:$4 sm:$0xff]   ;;  %v1695_v22 = vld [vmem:[#allocation7 + $0x50] ss:$8 sps:$4 sm:$0xff]   ;;  %v1696_v23 = vld [vmem:[#allocation7 + $0x64] ss:$8 sps:$4 sm:$0xff]  }
  0x76   :  { %685 = vmatpush1.bf16.msra.mxu0 %v1683_v13  ;;  %v1698_v24 = vld [vmem:[#allocation7 + $0x60] ss:$8 sps:$4 sm:$0xff]   ;;  %v1699_v25 = vld [vmem:[#allocation7 + $0x74] ss:$8 sps:$4 sm:$0xff]   ;;  %v1701_v26 = vld [vmem:[#allocation7 + $0x70] ss:$8 sps:$4 sm:$0xff]  }
  0x77   :  { %1477 = vmatmul.mubr.msk.bf16.vlgmr.msra.gmra.mrb[0].mxu1 %vm192_vm0, %v121_v8  ;;  %686 = vmatprep.subr.bf16.mxu0 %v1684_v14  ;;  %v1702_v27 = vld [vmem:[#allocation7 + $0x84] ss:$8 sps:$4 sm:$0xff]   ;;  %v1704_v28 = vld [vmem:[#allocation7 + $0x80] ss:$8 sps:$4 sm:$0xff]   ;;  %v1705_v29 = vld [vmem:[#allocation7 + $0x94] ss:$8 sps:$4 sm:$0xff]  }
  0x78   :  { %238 = vmatpush1.bf16.msra.mxu1 %v1672_v7  ;;  %269 = vmatprep.mubr.bf16.mxu1 %v2086_v0  ;;  %v1707_v30 = vld [vmem:[#allocation7 + $0x90] ss:$8 sps:$4 sm:$0xff]   ;;  %v1708_v31 = vld [vmem:[#allocation7 + $0xa4] ss:$8 sps:$4 sm:$0xff]   ;;  %v1710_v32 = vld [vmem:[#allocation7 + $0xa0] ss:$8 sps:$4 sm:$0xff]  }
  0x79   :  { %239 = vmatprep.subr.bf16.mxu1 %v1677_v12  ;;  %v1711_v33 = vld [vmem:[#allocation7 + $0xb4] ss:$8 sps:$4 sm:$0xff]   ;;  %v1713_v34 = vld [vmem:[#allocation7 + $0xb0] ss:$8 sps:$4 sm:$0xff]   ;;  %v1714_v35 = vld [vmem:[#allocation7 + $0xc4] ss:$8 sps:$4 sm:$0xff]  }
  0x7a   :  { %687 = vmatpush1.bf16.msra.mxu0 %v1686_v16  ;;  %v1716_v36 = vld [vmem:[#allocation7 + $0xc0] ss:$8 sps:$4 sm:$0xff]   ;;  %v1717_v37 = vld [vmem:[#allocation7 + $0xd4] ss:$8 sps:$4 sm:$0xff]   ;;  %v1719_v38 = vld [vmem:[#allocation7 + $0xd0] ss:$8 sps:$4 sm:$0xff]  }
  0x7b   :  { %688 = vmatprep.subr.bf16.mxu0 %v1687_v17  ;;  %v1720_v39 = vld [vmem:[#allocation7 + $0xe4] ss:$8 sps:$4 sm:$0xff]   ;;  %v1722_v40 = vld [vmem:[#allocation7 + $0xe0] ss:$8 sps:$4 sm:$0xff]   ;;  %v1723_v41 = vld [vmem:[#allocation7 + $0xf4] ss:$8 sps:$4 sm:$0xff]  }
  0x7c   :  { %240 = vmatpush1.bf16.msra.mxu1 %v1675_v15  ;;  %v1725_v42 = vld [vmem:[#allocation7 + $0xf0] ss:$8 sps:$4 sm:$0xff]   ;;  %v1728_v43 = vld [vmem:[#allocation7 + $0x104] ss:$8 sps:$4 sm:$0xff]   ;;  %v1774_v44 = vld [vmem:[#allocation8] ss:$8 sps:$4 sm:$0xff]  }
  0x7d   :  { %v1776_v45 = vld [vmem:[#allocation8 + $0x4] ss:$8 sps:$4 sm:$0xff]   ;;  %v1779_v46 = vld [vmem:[#allocation8 + $0x14] ss:$8 sps:$4 sm:$0xff]   ;;  %v1777_v47 = vld [vmem:[#allocation8 + $0x10] ss:$8 sps:$4 sm:$0xff]  }
  0x7e   :  { %689 = vmatpush1.bf16.msra.mxu0 %v1689_v18  ;;  %972 = vmatprep.subr.bf16.mxu1 %v1776_v45  ;;  %v1782_v48 = vld [vmem:[#allocation8 + $0x24] ss:$8 sps:$4 sm:$0xff]   ;;  %v1780_v49 = vld [vmem:[#allocation8 + $0x20] ss:$8 sps:$4 sm:$0xff]   ;;  %v1785_v50 = vld [vmem:[#allocation8 + $0x34] ss:$8 sps:$4 sm:$0xff]  }
  0x7f   :  { %1478 = vmatmul.mubr.msk.bf16.vlgmr.msra.gmra.mrb[4].mxu1 %vm192_vm0, %v121_v8  ;;  %690 = vmatprep.subr.bf16.mxu0 %v1690_v19  ;;  %v1783_v51 = vld [vmem:[#allocation8 + $0x30] ss:$8 sps:$4 sm:$0xff]   ;;  %v1788_v52 = vld [vmem:[#allocation8 + $0x44] ss:$8 sps:$4 sm:$0xff]   ;;  %v1786_v53 = vld [vmem:[#allocation8 + $0x40] ss:$8 sps:$4 sm:$0xff]  }
  0x80   :  { %973 = vmatpush1.bf16.msra.mxu1 %v1774_v44  ;;  %v1791_v54 = vld [vmem:[#allocation8 + $0x54] ss:$8 sps:$4 sm:$0xff]   ;;  %v1789_v55 = vld [vmem:[#allocation8 + $0x50] ss:$8 sps:$4 sm:$0xff]   ;;  %v1794_v56 = vld [vmem:[#allocation8 + $0x64] ss:$8 sps:$4 sm:$0xff]  }
  0x81   :  { %974 = vmatprep.subr.bf16.mxu1 %v1779_v46  ;;  %v1792_v57 = vld [vmem:[#allocation8 + $0x60] ss:$8 sps:$4 sm:$0xff]   ;;  %v1797_v58 = vld [vmem:[#allocation8 + $0x74] ss:$8 sps:$4 sm:$0xff]   ;;  %v1795_v59 = vld [vmem:[#allocation8 + $0x70] ss:$8 sps:$4 sm:$0xff]  }
  0x82   :  { %691 = vmatpush1.bf16.msra.mxu0 %v1692_v20  ;;  %v1800_v60 = vld [vmem:[#allocation8 + $0x84] ss:$8 sps:$4 sm:$0xff]   ;;  %v1798_v62 = vld [vmem:[#allocation8 + $0x80] ss:$8 sps:$4 sm:$0xff]   ;;  %v1803_v63 = vld [vmem:[#allocation8 + $0x94] ss:$8 sps:$4 sm:$0xff]  }
  0x83   :  { %692 = vmatprep.subr.bf16.mxu0 %v1693_v21  ;;  %v2231_v0 = vshrl.u32 %v132_v61, 7  ;;  %v1801_v1 = vld [vmem:[#allocation8 + $0x90] ss:$8 sps:$4 sm:$0xff]   ;;  %v1806_v2 = vld [vmem:[#allocation8 + $0xa4] ss:$8 sps:$4 sm:$0xff]   ;;  %s1457_s19 = sshll.u32 %s2087_s13, 4  ;;  %s1458_s19 = int_to_ptr.vmem [resolvable:$true] %s1457_s19 }
  0x84   :  { %975 = vmatpush1.bf16.msra.mxu1 %v1777_v47  ;;  %v1804_v4 = vld [vmem:[#allocation8 + $0xa0] ss:$8 sps:$4 sm:$0xff]   ;;  %v2239_v5 = vld [vmem:[%s2287_s2] sm:$0xf]  ;;  %v1809_v7 = vld [vmem:[#allocation8 + $0xb4] ss:$8 sps:$4 sm:$0xff]   ;;  %p2047_p7 = scmp.lt.s32.totalorder %s1458_s19, %s1458_s19 }
  0x85   :  { %976 = vmatprep.subr.bf16.mxu1 %v1782_v48  ;;  %v2234_v3 = vsub.s32 0, %v2231_v0  ;;  %v2242_v6 = vsub.s32 1, %v2231_v0  ;;  %v1807_v9 = vld [vmem:[#allocation8 + $0xb0] ss:$8 sps:$4 sm:$0xff]   ;;  %v146_v16 = vsub.s32 3, %v2231_v0 }
  0x86   :  { %693 = vmatpush1.bf16.msra.mxu0 %v1695_v22  ;;  %v1747_v44 = vld [vmem:[#allocation7 + $0x170] ss:$8 sps:$4 sm:$0xff]   ;;  %v1752_v45 = vld [vmem:[#allocation7 + $0x184] ss:$8 sps:$4 sm:$0xff]   ;;  %v1750_v46 = vld [vmem:[#allocation7 + $0x180] ss:$8 sps:$4 sm:$0xff]  }
  0x87   :  { %694 = vmatprep.subr.bf16.mxu0 %v1696_v23  ;;  %v135_v8 = vrot.slane %v2239_v5, %v2234_v3  ;;  %v139_v10 = vrot.slane %v2239_v5, %v2242_v6  ;;  %v147_v18 = vrot.slane %v2239_v5, %v146_v16  ;;  %v1755_v47 = vld [vmem:[#allocation7 + $0x194] ss:$8 sps:$4 sm:$0xff]   ;;  %v1753_v48 = vld [vmem:[#allocation7 + $0x190] ss:$8 sps:$4 sm:$0xff]   ;;  %v1768_v61 = vld [vmem:[#allocation7 + $0x1e0] ss:$8 sps:$4 sm:$0xff]  }
  0x88   :  { %977 = vmatpush1.bf16.msra.mxu1 %v1780_v49  ;;  %v1758_v49 = vld [vmem:[#allocation7 + $0x1a4] ss:$8 sps:$4 sm:$0xff]  }
  0x89   :  { %978 = vmatprep.subr.bf16.mxu1 %v1785_v50  ;;  %v1756_v50 = vld [vmem:[#allocation7 + $0x1a0] ss:$8 sps:$4 sm:$0xff]  }
  0x8a   :  { %695 = vmatpush1.bf16.msra.mxu0 %v1698_v24 }
  0x8b   :  { %696 = vmatprep.subr.bf16.mxu0 %v1699_v25 }
  0x8c   :  { %979 = vmatpush1.bf16.msra.mxu1 %v1783_v51  ;;  %v142_v51 = vsub.s32 2, %v2231_v0 }
  0x8d   :  { %980 = vmatprep.subr.bf16.mxu1 %v1788_v52  ;;  %v1761_v52 = vld [vmem:[#allocation7 + $0x1b4] ss:$8 sps:$4 sm:$0xff]  }
  0x8e   :  { %697 = vmatpush1.bf16.msra.mxu0 %v1701_v26 }
  0x8f   :  { %698 = vmatprep.subr.bf16.mxu0 %v1702_v27  ;;  %v1726_v27 = vld [vmem:[#allocation7 + $0x100] ss:$8 sps:$4 sm:$0xff]  }
  0x90   :  { %981 = vmatpush1.bf16.msra.mxu1 %v1786_v53  ;;  %v143_v53 = vrot.slane %v2239_v5, %v142_v51  ;;  %v1815_v5 = vld [vmem:[#allocation8 + $0xd4] ss:$8 sps:$4 sm:$0xff]  }
  0x91   :  { %982 = vmatprep.subr.bf16.mxu1 %v1791_v54  ;;  %v1759_v54 = vld [vmem:[#allocation7 + $0x1b0] ss:$8 sps:$4 sm:$0xff]   ;;  %v1863_v51 = vld [vmem:[#allocation10 + $0xd4] ss:$8 sps:$4 sm:$0xff]  }
  0x92   :  { %699 = vmatpush1.bf16.msra.mxu0 %v1704_v28 }
  0x93   :  { %700 = vmatprep.subr.bf16.mxu0 %v1705_v29  ;;  %v1731_v29 = vld [vmem:[#allocation7 + $0x114] ss:$8 sps:$4 sm:$0xff]  }
  0x94   :  { %983 = vmatpush1.bf16.msra.mxu1 %v1789_v55  ;;  %v1764_v55 = vld [vmem:[#allocation7 + $0x1c4] ss:$8 sps:$4 sm:$0xff]  }
  0x95   :  { %984 = vmatprep.subr.bf16.mxu1 %v1794_v56 }
  0x96   :  { %701 = vmatpush1.bf16.msra.mxu0 %v1707_v30  ;;  %v1729_v30 = vld [vmem:[#allocation7 + $0x110] ss:$8 sps:$4 sm:$0xff]  }
  0x97   :  { %702 = vmatprep.subr.bf16.mxu0 %v1708_v31  ;;  %v1734_v31 = vld [vmem:[#allocation7 + $0x124] ss:$8 sps:$4 sm:$0xff]  }
  0x98   :  { %985 = vmatpush1.bf16.msra.mxu1 %v1792_v57  ;;  %v1762_v57 = vld [vmem:[#allocation7 + $0x1c0] ss:$8 sps:$4 sm:$0xff]  }
  0x99   :  { %986 = vmatprep.subr.bf16.mxu1 %v1797_v58  ;;  %v1767_v58 = vld [vmem:[#allocation7 + $0x1d4] ss:$8 sps:$4 sm:$0xff]  }
  0x9a   :  { %703 = vmatpush1.bf16.msra.mxu0 %v1710_v32 }
  0x9b   :  { %704 = vmatprep.subr.bf16.mxu0 %v1711_v33  ;;  %v1732_v33 = vld [vmem:[#allocation7 + $0x120] ss:$8 sps:$4 sm:$0xff]  }
  0x9c   :  { %987 = vmatpush1.bf16.msra.mxu1 %v1795_v59  ;;  %v1765_v59 = vld [vmem:[#allocation7 + $0x1d0] ss:$8 sps:$4 sm:$0xff]  }
  0x9d   :  { %988 = vmatprep.subr.bf16.mxu1 %v1800_v60  ;;  %v1770_v60 = vld [vmem:[#allocation7 + $0x1e4] ss:$8 sps:$4 sm:$0xff]  }
  0x9e   :  { %705 = vmatpush1.bf16.msra.mxu0 %v1713_v34 }
  0x9f   :  { %706 = vmatprep.subr.bf16.mxu0 %v1714_v35  ;;  %v1737_v35 = vld [vmem:[#allocation7 + $0x134] ss:$8 sps:$4 sm:$0xff]  }
  0xa0   :  { %989 = vmatpush1.bf16.msra.mxu1 %v1798_v62  ;;  %v1773_v62 = vld [vmem:[#allocation7 + $0x1f4] ss:$8 sps:$4 sm:$0xff]  }
  0xa1   :  { %990 = vmatprep.subr.bf16.mxu1 %v1803_v63  ;;  %v1771_v63 = vld [vmem:[#allocation7 + $0x1f0] ss:$8 sps:$4 sm:$0xff]  }
  0xa2   :  { %707 = vmatpush1.bf16.msra.mxu0 %v1716_v36  ;;  %v1735_v36 = vld [vmem:[#allocation7 + $0x130] ss:$8 sps:$4 sm:$0xff]  }
  0xa3   :  { %708 = vmatprep.subr.bf16.mxu0 %v1717_v37  ;;  %v1740_v37 = vld [vmem:[#allocation7 + $0x144] ss:$8 sps:$4 sm:$0xff]  }
  0xa4   :  { %991 = vmatpush1.bf16.msra.mxu1 %v1801_v1 }
  0xa5   :  { %992 = vmatprep.subr.bf16.mxu1 %v1806_v2  ;;  %v1812_v2 = vld [vmem:[#allocation8 + $0xc4] ss:$8 sps:$4 sm:$0xff]  }
  0xa6   :  { %709 = vmatpush1.bf16.msra.mxu0 %v1719_v38  ;;  %v1738_v38 = vld [vmem:[#allocation7 + $0x140] ss:$8 sps:$4 sm:$0xff]  }
  0xa7   :  { %710 = vmatprep.subr.bf16.mxu0 %v1720_v39  ;;  %v1743_v39 = vld [vmem:[#allocation7 + $0x154] ss:$8 sps:$4 sm:$0xff]  }
  0xa8   :  { %993 = vmatpush1.bf16.msra.mxu1 %v1804_v4  ;;  %v1810_v4 = vld [vmem:[#allocation8 + $0xc0] ss:$8 sps:$4 sm:$0xff]  }
  0xa9   :  { %994 = vmatprep.subr.bf16.mxu1 %v1809_v7  ;;  %v1813_v7 = vld [vmem:[#allocation8 + $0xd0] ss:$8 sps:$4 sm:$0xff]  }
  0xaa   :  { %711 = vmatpush1.bf16.msra.mxu0 %v1722_v40  ;;  %v1741_v40 = vld [vmem:[#allocation7 + $0x150] ss:$8 sps:$4 sm:$0xff]  }
  0xab   :  { %712 = vmatprep.subr.bf16.mxu0 %v1723_v41  ;;  %v1746_v41 = vld [vmem:[#allocation7 + $0x164] ss:$8 sps:$4 sm:$0xff]  }
  0xac   :  { %995 = vmatpush1.bf16.msra.mxu1 %v1807_v9  ;;  %v1816_v9 = vld [vmem:[#allocation8 + $0xe0] ss:$8 sps:$4 sm:$0xff]  }
  0xad   :  { %996 = vmatprep.subr.bf16.mxu1 %v1812_v2 }
  0xae   :  { %713 = vmatpush1.bf16.msra.mxu0 %v1725_v42  ;;  %v1744_v42 = vld [vmem:[#allocation7 + $0x160] ss:$8 sps:$4 sm:$0xff]  }
  0xaf   :  { %723 = vmatprep.subr.bf16.mxu0 %v1728_v43  ;;  %v1749_v43 = vld [vmem:[#allocation7 + $0x174] ss:$8 sps:$4 sm:$0xff]  }
  0xb0   :  { %997 = vmatpush1.bf16.msra.mxu1 %v1810_v4 }
  0xb1   :  { %998 = vmatprep.subr.bf16.mxu1 %v1815_v5 }
  0xb4   :  { %999 = vmatpush1.bf16.msra.mxu1 %v1813_v7 }
 0x14a   :  { %v230_v11 = vpop.f32.mrb[0].mxu1 }
 0x14b   :  { %v231_v12 = vadd.f32 %v230_v11, %v135_v8  ;;  %v232_v13 = vpop.f32.mrb[1].mxu1  ;;  %v1818_v8 = vld [vmem:[#allocation8 + $0xe4] ss:$8 sps:$4 sm:$0xff]   ;;  %v1819_v11 = vld [vmem:[#allocation8 + $0xf0] ss:$8 sps:$4 sm:$0xff]  }
 0x14c   :  { %v233_v14 = vadd.f32 %v232_v13, %v139_v10  ;;  %v234_v15 = vpop.f32.mrb[2].mxu1  ;;  %1000 = vmatprep.subr.bf16.mxu1 %v1818_v8  ;;  %v1821_v10 = vld [vmem:[#allocation8 + $0xf4] ss:$8 sps:$4 sm:$0xff]   ;;  %v350_v13 = vld [vmem:[%s2289_s4] sm:$0x3] }
 0x14d   :  { %1886 = vtanh.f32 %v231_v12  ;;  %v235_v17 = vpop.f32.mrb[3].mxu1  ;;  %1001 = vmatpush1.bf16.msra.mxu1 %v1816_v9  ;;  %v1824_v12 = vld [vmem:[#allocation10 + $0x4] ss:$8 sps:$4 sm:$0xff]   ;;  %v359_v15 = vrot.slane %v350_v13, %v2242_v6 }
 0x14e   :  { %1888 = vtanh.f32 %v233_v14  ;;  %1002 = vmatprep.subr.bf16.mxu1 %v1821_v10  ;;  %v355_v14 = vrot.slane %v350_v13, %v2234_v3 }
 0x151   :  { %1003 = vmatpush1.bf16.msra.mxu1 %v1819_v11 }
 0x152   :  { %v2250_v19 = vpop.f32.mrb[4].mxu1  ;;  %1221 = vmatprep.subr.bf16.mxu1 %v1824_v12 }
 0x153   :  { %v273_v20 = vpop.f32.mrb[5].mxu1  ;;  %v272_v56 = vadd.f32 %v2250_v19, %v143_v53  ;;  %v1866_v53 = vld [vmem:[#allocation10 + $0xe4] ss:$8 sps:$4 sm:$0xff]  }
 0x154   :  { %v274_v21 = vadd.f32 %v273_v20, %v147_v18  ;;  %v275_v22 = vpop.f32.mrb[6].mxu1 }
 0x155   :  { %v276_v23 = vpop.f32.mrb[7].mxu1 }
 0x156   :  { %1890 = vtanh.f32 %v274_v21 }
 0x157   :  { %v1887_v24 = vpop.eup %1886  ;;  %1892 = vtanh.f32 %v272_v56  ;;  %v1867_v56 = vld [vmem:[#allocation10 + $0xf0] ss:$8 sps:$4 sm:$0xff]  }
 0x158   :  { %v1889_v25 = vpop.eup %1888  ;;  %v282_v28 = vpack.c.bf16 %v1887_v24, %v1887_v24 }
 0x159   :  { %v283_v26 = vpack.c.bf16 %v1889_v25, %v1889_v25  ;;  %v1822_v25 = vld [vmem:[#allocation10] ss:$8 sps:$4 sm:$0xff]  }
 0x15b   :  { %714 = vmatprep.mubr.bf16.mxu0 %v283_v26 }
 0x15c   :  { %715 = vmatmul.mubr.bf16.vlgmr.msra.gmra.mrb[0].mxu0 %v282_v28  ;;  %v1825_v28 = vld [vmem:[#allocation10 + $0x10] ss:$8 sps:$4 sm:$0xff]  }
 0x15d   :  { %724 = vmatpush1.bf16.msra.mxu0 %v1726_v27  ;;  %v1827_v27 = vld [vmem:[#allocation10 + $0x14] ss:$8 sps:$4 sm:$0xff]  }
 0x15e   :  { %725 = vmatprep.subr.bf16.mxu0 %v1731_v29  ;;  %v1830_v29 = vld [vmem:[#allocation10 + $0x24] ss:$8 sps:$4 sm:$0xff]  }
 0x160   :  { %v1891_v32 = vpop.eup %1890 }
 0x161   :  { %726 = vmatpush1.bf16.msra.mxu0 %v1729_v30  ;;  %v285_v34 = vpack.c.bf16 %v1891_v32, %v1891_v32  ;;  %v1893_v0 = vpop.eup %1892  ;;  %v1828_v30 = vld [vmem:[#allocation10 + $0x20] ss:$8 sps:$4 sm:$0xff]   ;;  %v1831_v32 = vld [vmem:[#allocation10 + $0x30] ss:$8 sps:$4 sm:$0xff]  }
 0x162   :  { %727 = vmatprep.subr.bf16.mxu0 %v1734_v31  ;;  %v284_v1 = vpack.c.bf16 %v1893_v0, %v1893_v0  ;;  %v1833_v31 = vld [vmem:[#allocation10 + $0x34] ss:$8 sps:$4 sm:$0xff]  }
 0x163   :  { %755 = vmatprep.mubr.bf16.mxu0 %v285_v34  ;;  %v1834_v34 = vld [vmem:[#allocation10 + $0x40] ss:$8 sps:$4 sm:$0xff]   ;;  %v1877_v0 = vld [vmem:[#allocation11 + $0x18] sm:$0xff]  }
 0x165   :  { %728 = vmatpush1.bf16.msra.mxu0 %v1732_v33  ;;  %v1836_v33 = vld [vmem:[#allocation10 + $0x44] ss:$8 sps:$4 sm:$0xff]  }
 0x166   :  { %729 = vmatprep.subr.bf16.mxu0 %v1737_v35  ;;  %v1839_v35 = vld [vmem:[#allocation10 + $0x54] ss:$8 sps:$4 sm:$0xff]  }
 0x169   :  { %730 = vmatpush1.bf16.msra.mxu0 %v1735_v36  ;;  %v1837_v36 = vld [vmem:[#allocation10 + $0x50] ss:$8 sps:$4 sm:$0xff]  }
 0x16a   :  { %731 = vmatprep.subr.bf16.mxu0 %v1740_v37  ;;  %v1842_v37 = vld [vmem:[#allocation10 + $0x64] ss:$8 sps:$4 sm:$0xff]  }
 0x16d   :  { %732 = vmatpush1.bf16.msra.mxu0 %v1738_v38  ;;  %v1840_v38 = vld [vmem:[#allocation10 + $0x60] ss:$8 sps:$4 sm:$0xff]  }
 0x16e   :  { %733 = vmatprep.subr.bf16.mxu0 %v1743_v39  ;;  %v1845_v39 = vld [vmem:[#allocation10 + $0x74] ss:$8 sps:$4 sm:$0xff]  }
 0x171   :  { %734 = vmatpush1.bf16.msra.mxu0 %v1741_v40  ;;  %v1843_v40 = vld [vmem:[#allocation10 + $0x70] ss:$8 sps:$4 sm:$0xff]  }
 0x172   :  { %735 = vmatprep.subr.bf16.mxu0 %v1746_v41  ;;  %v1848_v41 = vld [vmem:[#allocation10 + $0x84] ss:$8 sps:$4 sm:$0xff]  }
 0x175   :  { %736 = vmatpush1.bf16.msra.mxu0 %v1744_v42  ;;  %v1846_v42 = vld [vmem:[#allocation10 + $0x80] ss:$8 sps:$4 sm:$0xff]  }
 0x176   :  { %737 = vmatprep.subr.bf16.mxu0 %v1749_v43  ;;  %v1851_v43 = vld [vmem:[#allocation10 + $0x94] ss:$8 sps:$4 sm:$0xff]  }
 0x179   :  { %738 = vmatpush1.bf16.msra.mxu0 %v1747_v44  ;;  %v1849_v44 = vld [vmem:[#allocation10 + $0x90] ss:$8 sps:$4 sm:$0xff]  }
 0x17a   :  { %739 = vmatprep.subr.bf16.mxu0 %v1752_v45  ;;  %v1854_v45 = vld [vmem:[#allocation10 + $0xa4] ss:$8 sps:$4 sm:$0xff]  }
 0x17d   :  { %740 = vmatpush1.bf16.msra.mxu0 %v1750_v46  ;;  %v1852_v46 = vld [vmem:[#allocation10 + $0xa0] ss:$8 sps:$4 sm:$0xff]  }
 0x17e   :  { %741 = vmatprep.subr.bf16.mxu0 %v1755_v47  ;;  %v1857_v47 = vld [vmem:[#allocation10 + $0xb4] ss:$8 sps:$4 sm:$0xff]  }
 0x181   :  { %742 = vmatpush1.bf16.msra.mxu0 %v1753_v48  ;;  %v1855_v48 = vld [vmem:[#allocation10 + $0xb0] ss:$8 sps:$4 sm:$0xff]  }
 0x182   :  { %743 = vmatprep.subr.bf16.mxu0 %v1758_v49  ;;  %v1860_v49 = vld [vmem:[#allocation10 + $0xc4] ss:$8 sps:$4 sm:$0xff]  }
 0x185   :  { %744 = vmatpush1.bf16.msra.mxu0 %v1756_v50  ;;  %v1858_v50 = vld [vmem:[#allocation10 + $0xc0] ss:$8 sps:$4 sm:$0xff]  }
 0x186   :  { %745 = vmatprep.subr.bf16.mxu0 %v1761_v52  ;;  %v1861_v52 = vld [vmem:[#allocation10 + $0xd0] ss:$8 sps:$4 sm:$0xff]  }
 0x189   :  { %746 = vmatpush1.bf16.msra.mxu0 %v1759_v54  ;;  %v1864_v54 = vld [vmem:[#allocation10 + $0xe0] ss:$8 sps:$4 sm:$0xff]  }
 0x18a   :  { %747 = vmatprep.subr.bf16.mxu0 %v1764_v55  ;;  %v1869_v55 = vld [vmem:[#allocation10 + $0xf4] ss:$8 sps:$4 sm:$0xff]  }
 0x18d   :  { %748 = vmatpush1.bf16.msra.mxu0 %v1762_v57  ;;  %v1870_v57 = vld [vmem:[#allocation11 + $0x40] sm:$0xff]  }
 0x18e   :  { %749 = vmatprep.subr.bf16.mxu0 %v1767_v58  ;;  %v1871_v58 = vld [vmem:[#allocation11] sm:$0xff]  }
 0x191   :  { %750 = vmatpush1.bf16.msra.mxu0 %v1765_v59  ;;  %v1872_v59 = vld [vmem:[#allocation11 + $0x48] sm:$0xff]  }
 0x192   :  { %751 = vmatprep.subr.bf16.mxu0 %v1770_v60  ;;  %v1873_v60 = vld [vmem:[#allocation11 + $0x8] sm:$0xff]  }
 0x195   :  { %752 = vmatpush1.bf16.msra.mxu0 %v1768_v61  ;;  %v1874_v61 = vld [vmem:[#allocation11 + $0x50] sm:$0xff]  }
 0x196   :  { %753 = vmatprep.subr.bf16.mxu0 %v1773_v62  ;;  %v1875_v62 = vld [vmem:[#allocation11 + $0x10] sm:$0xff]  }
 0x199   :  { %754 = vmatpush1.bf16.msra.mxu0 %v1771_v63  ;;  %v1876_v63 = vld [vmem:[#allocation11 + $0x58] sm:$0xff]  }
 0x19a   :  { %1624 = vmatprep.subr.bf16.mxu0 %v1870_v57 }
 0x19c   :  { %756 = vmatmul.mubr.bf16.vlgmr.msra.gmra.mrb[0].mxu0 %v284_v1  ;;  %v800_v1 = vld [vmem:[%s2291_s6] sm:$0x3] }
 0x19d   :  { %1625 = vmatpush3.bf16.msra.mxu0 %v1871_v58  ;;  %v805_v2 = vrot.slane %v800_v1, %v2234_v3  ;;  %v809_v4 = vrot.slane %v800_v1, %v2242_v6 }
 0x19e   :  { %1626 = vmatprep.subr.bf16.mxu0 %v1872_v59 }
 0x1a1   :  { %1627 = vmatpush3.bf16.msra.mxu0 %v1873_v60 }
 0x1a2   :  { %1628 = vmatprep.subr.bf16.mxu0 %v1874_v61 }
 0x1a5   :  { %1629 = vmatpush3.bf16.msra.mxu0 %v1875_v62 }
 0x1a6   :  { %1630 = vmatprep.subr.bf16.mxu0 %v1876_v63 }
 0x1a9   :  { %1631 = vmatpush3.bf16.msra.mxu0 %v1877_v0 }
 0x26f   :  { %v757_v16 = vpop.f32.mrb[0].mxu0 }
 0x270   :  { %v1646_v17 = vadd.f32 %v757_v16, %v355_v14  ;;  %v759_v18 = vpop.f32.mrb[1].mxu0  ;;  %v1878_v16 = vld [vmem:[#allocation11 + $0x60] sm:$0xff]  }
 0x271   :  { %v1647_v19 = vadd.f32 %v759_v18, %v359_v15  ;;  %v761_v20 = vpop.f32.mrb[2].mxu0  ;;  %1632 = vmatprep.subr.bf16.mxu0 %v1878_v16  ;;  %v1880_v18 = vld [vmem:[#allocation11 + $0x68] sm:$0xff]  }
 0x272   :  { %1894 = vtanh.f32 %v1646_v17  ;;  %v762_v21 = vpop.f32.mrb[3].mxu0  ;;  %v1879_v17 = vld [vmem:[#allocation11 + $0x20] sm:$0xff]   ;;  %v1882_v20 = vld [vmem:[#allocation11 + $0x70] sm:$0xff]  }
 0x273   :  { %1896 = vtanh.f32 %v1647_v19  ;;  %1633 = vmatpush3.bf16.msra.mxu0 %v1879_v17  ;;  %v1881_v19 = vld [vmem:[#allocation11 + $0x28] sm:$0xff]   ;;  %v1883_v21 = vld [vmem:[#allocation11 + $0x30] sm:$0xff]  }
 0x274   :  { %1634 = vmatprep.subr.bf16.mxu0 %v1880_v18 }
 0x277   :  { %1635 = vmatpush3.bf16.msra.mxu0 %v1881_v19 }
 0x278   :  { %1636 = vmatprep.subr.bf16.mxu0 %v1882_v20 }
 0x27b   :  { %1637 = vmatpush3.bf16.msra.mxu0 %v1883_v21 }
 0x27c   :  { %v1895_v22 = vpop.eup %1894 }
 0x27d   :  { %v1897_v23 = vpop.eup %1896  ;;  %v766_v26 = vpack.c.bf16 %v1895_v22, %v1895_v22  ;;  %v1884_v22 = vld [vmem:[#allocation11 + $0x78] sm:$0xff]  }
 0x27e   :  { %v767_v24 = vpack.c.bf16 %v1897_v23, %v1897_v23  ;;  %v1885_v23 = vld [vmem:[#allocation11 + $0x38] sm:$0xff]   ;;  %1638 = vmatprep.subr.bf16.mxu0 %v1884_v22 }
 0x27f   :  { %1639 = vmatpush3.bf16.msra.mxu0 %v1885_v23 }
 0x280   :  { %1004 = vmatprep.mubr.bf16.mxu1 %v767_v24  ;;  %v1049_v24 = vld [vmem:[%s2293_s8] sm:$0x3] }
 0x281   :  { %1005 = vmatmul.mubr.bf16.vlgmr.msra.gmra.mrb[8].mxu1 %v766_v26  ;;  %v1058_v26 = vrot.slane %v1049_v24, %v2242_v6 }
 0x282   :  { %1222 = vmatpush1.bf16.msra.mxu1 %v1822_v25  ;;  %v1054_v25 = vrot.slane %v1049_v24, %v2234_v3  ;;  %v1607_v3 = vld [vmem:[%s2295_s10] ss:$0 sm:$0xff]  ;;  %s2042_s10 = scalar_lea.vmem %s1458_s19, 128 }
 0x283   :  { %1223 = vmatprep.subr.bf16.mxu1 %v1827_v27  ;;  %p2043_p6 = scmp.ne.s32.totalorder %s1458_s19, %s2042_s10  ;;  %p2048_p8 = scmp.lt.s32.totalorder %s2042_s10, %s2042_s10 }
 0x285   :  { %p2049_p9 = por %p2048_p8, %p2047_p7 }
 0x286   :  { %1224 = vmatpush1.bf16.msra.mxu1 %v1825_v28 }
 0x287   :  { %1225 = vmatprep.subr.bf16.mxu1 %v1830_v29  ;;  %p2050_p10 = pnand %p2049_p9, %p2043_p6 }
 0x28a   :  { %1226 = vmatpush1.bf16.msra.mxu1 %v1828_v30 }
 0x28b   :  { %1227 = vmatprep.subr.bf16.mxu1 %v1833_v31 }
 0x28e   :  { %1228 = vmatpush1.bf16.msra.mxu1 %v1831_v32 }
 0x28f   :  { %1229 = vmatprep.subr.bf16.mxu1 %v1836_v33 }
 0x292   :  { %1230 = vmatpush1.bf16.msra.mxu1 %v1834_v34 }
 0x293   :  { %1231 = vmatprep.subr.bf16.mxu1 %v1839_v35 }
 0x296   :  { %1232 = vmatpush1.bf16.msra.mxu1 %v1837_v36 }
 0x297   :  { %1233 = vmatprep.subr.bf16.mxu1 %v1842_v37 }
 0x29a   :  { %1234 = vmatpush1.bf16.msra.mxu1 %v1840_v38 }
 0x29b   :  { %1235 = vmatprep.subr.bf16.mxu1 %v1845_v39 }
 0x29e   :  { %1236 = vmatpush1.bf16.msra.mxu1 %v1843_v40 }
 0x29f   :  { %1237 = vmatprep.subr.bf16.mxu1 %v1848_v41 }
 0x2a2   :  { %1238 = vmatpush1.bf16.msra.mxu1 %v1846_v42 }
 0x2a3   :  { %1239 = vmatprep.subr.bf16.mxu1 %v1851_v43 }
 0x2a6   :  { %1240 = vmatpush1.bf16.msra.mxu1 %v1849_v44 }
 0x2a7   :  { %1241 = vmatprep.subr.bf16.mxu1 %v1854_v45 }
 0x2aa   :  { %1242 = vmatpush1.bf16.msra.mxu1 %v1852_v46 }
 0x2ab   :  { %1243 = vmatprep.subr.bf16.mxu1 %v1857_v47 }
 0x2ae   :  { %1244 = vmatpush1.bf16.msra.mxu1 %v1855_v48 }
 0x2af   :  { %1245 = vmatprep.subr.bf16.mxu1 %v1860_v49 }
 0x2b2   :  { %1246 = vmatpush1.bf16.msra.mxu1 %v1858_v50 }
 0x2b3   :  { %1247 = vmatprep.subr.bf16.mxu1 %v1863_v51 }
 0x2b6   :  { %1248 = vmatpush1.bf16.msra.mxu1 %v1861_v52 }
 0x2b7   :  { %1249 = vmatprep.subr.bf16.mxu1 %v1866_v53 }
 0x2ba   :  { %1250 = vmatpush1.bf16.msra.mxu1 %v1864_v54 }
 0x2bb   :  { %1251 = vmatprep.subr.bf16.mxu1 %v1869_v55 }
 0x2be   :  { %1252 = vmatpush1.bf16.msra.mxu1 %v1867_v56 }
 0x354   :  { %v1006_v5 = vpop.f32.mrb[8].mxu1 }
 0x355   :  { %v1007_v7 = vadd.f32 %v1006_v5, %v805_v2  ;;  %v1008_v8 = vpop.f32.mrb[9].mxu1 }
 0x356   :  { %v1009_v9 = vadd.f32 %v1008_v8, %v809_v4  ;;  %v1010_v10 = vpop.f32.mrb[10].mxu1 }
 0x357   :  { %1898 = vtanh.f32 %v1007_v7  ;;  %v1011_v11 = vpop.f32.mrb[11].mxu1 }
 0x358   :  { %1900 = vtanh.f32 %v1009_v9 }
 0x361   :  { %v1899_v12 = vpop.eup %1898 }
 0x362   :  { %v1901_v13 = vpop.eup %1900  ;;  %v1015_v15 = vpack.c.bf16 %v1899_v12, %v1899_v12 }
 0x363   :  { %v1016_v14 = vpack.c.bf16 %v1901_v13, %v1901_v13 }
 0x365   :  { %1253 = vmatprep.mubr.bf16.mxu1 %v1016_v14 }
 0x366   :  { %1254 = vmatmul.mubr.bf16.vlgmr.msra.gmra.mrb[12].mxu1 %v1015_v15 }
 0x439   :  { %v1255_v27 = vpop.f32.mrb[12].mxu1 }
 0x43a   :  { %v1256_v28 = vadd.f32 %v1255_v27, %v1054_v25  ;;  %v1257_v29 = vpop.f32.mrb[13].mxu1 }
 0x43b   :  { %v1258_v30 = vadd.f32 %v1257_v29, %v1058_v26  ;;  %v1259_v31 = vpop.f32.mrb[14].mxu1 }
 0x43c   :  { %1902 = vtanh.f32 %v1256_v28  ;;  %v1260_v32 = vpop.f32.mrb[15].mxu1 }
 0x43d   :  { %1904 = vtanh.f32 %v1258_v30 }
 0x446   :  { %v1903_v33 = vpop.eup %1902 }
 0x447   :  { %v1905_v34 = vpop.eup %1904  ;;  %v1264_v36 = vpack.c.bf16 %v1903_v33, %v1903_v33 }
 0x448   :  { %v1265_v35 = vpack.c.bf16 %v1905_v34, %v1905_v34 }
 0x44a   :  { %1433 = vmatprep.mubr.bf16.mxu0 %v1265_v35 }
 0x44b   :  { %1434 = vmatmul.mubr.bf16.vlgmr.msra.gmra.mrb[4].mxu0 %v1264_v36 }
 0x51e   :  { %v1640_v37 = vpop.f32.mrb[4].mxu0 }
 0x51f   :  { %v1641_v38 = vpop.f32.mrb[5].mxu0 }
 0x520   :  { %v1642_v6 = vadd.f32 %v1641_v38, %v1640_v37  ;;  %v1643_v39 = vpop.f32.mrb[6].mxu0 }
 0x521   :  { %v1644_v40 = vpop.f32.mrb[7].mxu0 }
 0x522   :  { %v1436_v41 = vadd.f32 %v1642_v6, %v1607_v3 }
 0x524   :  { %1441 = vmax.xlane.f32.xlu0 %v1436_v41 }
 0x5b1   :  { %v1442_v42 = vpop.xlane.xlu0 %1441 }
 0x5b2   :  { %v1443_v43 = vsub.f32 %v1436_v41, %v1442_v42 }
 0x5b4   :  { %v1444_v44 = vmul.f32 1.442695, %v1443_v43 }
 0x5b6   :  { %1906 = vpow2.f32 %v1444_v44 }
 0x5c0   :  { %v1907_v45 = vpop.eup %1906 }
 0x5c1   :  { %1446 = vadd.xlane.f32.xlu0 %v1907_v45 }
 0x64e   :  { %v1447_v46 = vpop.xlane.xlu0 %1446 }
 0x64f   :  { %1908 = vrcp.f32 %v1447_v46 }
 0x659   :  { %v1909_v47 = vpop.eup %1908 }
 0x65a   :  { %v1449_v48 = vmul.f32 %v1909_v47, %v1907_v45 }
 0x65c   :  { %1450 = vst [vmem:[#allocation13] sm:$0xff] %v1449_v48 }
 0x65d   :  { %2053 = shalt.err (!%p2050_p10)
}
 0x65e   :  { %s2054_s20 = scalar_lea.hbm %s2296_s11, 128 }
 0x65f   :  { %p2055_p11 = scmp.ne.s32.totalorder %s2296_s11, %s2054_s20  ;;  %p2058_p12 = scmp.lt.u32.totalorder %s2054_s20, %s2296_s11 }
 0x661   :  { %p2060_p13 = pnand %p2058_p12, %p2055_p11 }
 0x663   :  { %2063 = shalt.err (!%p2060_p13)
}
 0x664   :  { %1460 = dma.vmem_to_hbm [thread:$0]  %s1458_s19, 128, %s2296_s11, [#allocation4]  }
 0x665   :  { %2072 = dma.done.wait [#allocation4], 128  }
 0x666   :  { %2073 = vsyncadd [#allocation4], 4294967168 }
 0x667   :  { %1464 = vsyncpa [#allocation3], 1 }
 0x668   :  { %1465 = vsyncpa [#allocation6], 1 }
 0x669   :  { %1466 = vsyncpa [#allocation9], 1 }
 0x66a   :  { %1467 = vsyncpa [#allocation12], 1 }
 0x66b   :  { %1468 = vsyncpa [#allocation4], 1 }

</bundles_post_ra>
